<compile_context>
chip_gen: v5e
topology: v5e:2x2
jax: 0.10.0
libtpu: 0.0.40
codegen_flags: <defaults>
</compile_context>

<pallas_src>
import jax
import jax.numpy as jnp
from jax.experimental import pallas as pl
from jax.experimental.pallas import tpu as pltpu


# ---------------------------------------------------------------------------
# Kernel
# ---------------------------------------------------------------------------
def edge_mlp_kernel(src_ref, dest_ref, edge_ref,
                    w1s_ref, w1d_ref, w1e_ref, b1_ref,
                    w2_ref, b2_ref, out_ref):
    """One tile of packed edges through Linear -> ReLU -> Linear."""
    mdt = w1s_ref.dtype  # MXU operand dtype; accumulation is always f32.

    # Layer 1: cat([src, dest, edge]) @ W1 as a sum of three MXU matmuls on
    # block-diagonally packed weights, + bias, ReLU on the VPU.
    h = (jnp.dot(src_ref[...].astype(mdt), w1s_ref[...],
                 preferred_element_type=jnp.float32)
         + jnp.dot(dest_ref[...].astype(mdt), w1d_ref[...],
                   preferred_element_type=jnp.float32)
         + jnp.dot(edge_ref[...].astype(mdt), w1e_ref[...],
                   preferred_element_type=jnp.float32)
         + b1_ref[...])
    h = jnp.maximum(h, 0.0)
    # TODO(synk): only the default 'relu' activation is implemented (the
    # module's optional ELU/Tanh would swap this VPU max for an EUP path).

    # Layer 2: Linear.
    y = jnp.dot(h.astype(mdt), w2_ref[...],
                preferred_element_type=jnp.float32) + b2_ref[...]
    out_ref[...] = y.astype(out_ref.dtype)


# ---------------------------------------------------------------------------
# Packing helpers (run once, outside the per-call forward)
# ---------------------------------------------------------------------------
def _lane_packing(num_edge_features, lanes=128):
    """Return (P, Fe_pad): fold P edges per 128-lane row; pad Fe to Fe_pad."""
    if num_edge_features >= lanes:
        fe_pad = pl.cdiv(num_edge_features, lanes) * lanes
        return 1, fe_pad
    fe_pad = 1
    while fe_pad < num_edge_features:
        fe_pad *= 2
    return lanes // fe_pad, fe_pad


def pack_edge_model_params(params, num_node_features, num_edge_features,
                           matmul_dtype=jnp.bfloat16):
    """Transpose, split, kron-pack and cast the weights once."""
    Fn, Fe = num_node_features, num_edge_features
    in_size = 2 * Fn + Fe
    hidden = in_size // 2
    P, Fe_pad = _lane_packing(Fe)

    w1t = params["w1"].T.astype(jnp.float32)          # (in_size, hidden)
    w2t = params["w2"].T.astype(jnp.float32)          # (hidden, Fe)
    w1t_e = w1t[2 * Fn:]                              # (Fe, hidden)
    b2 = params["b2"].astype(jnp.float32)
    if Fe_pad != Fe:
        w1t_e = jnp.pad(w1t_e, ((0, Fe_pad - Fe), (0, 0)))
        w2t = jnp.pad(w2t, ((0, 0), (0, Fe_pad - Fe)))
        b2 = jnp.pad(b2, (0, Fe_pad - Fe))

    eye = jnp.eye(P, dtype=jnp.float32)
    packed = {
        "w1s": jnp.kron(eye, w1t[:Fn]).astype(matmul_dtype),        # (P*Fn, P*hidden)
        "w1d": jnp.kron(eye, w1t[Fn:2 * Fn]).astype(matmul_dtype),  # (P*Fn, P*hidden)
        "w1e": jnp.kron(eye, w1t_e).astype(matmul_dtype),           # (P*Fe_pad, P*hidden)
        "b1": jnp.tile(params["b1"].astype(jnp.float32), P)[None, :],
        "w2": jnp.kron(eye, w2t).astype(matmul_dtype),              # (P*hidden, P*Fe_pad)
        "b2": jnp.tile(b2, P)[None, :],
    }
    meta = {"Fn": Fn, "Fe": Fe, "Fe_pad": Fe_pad, "hidden": hidden, "P": P}
    return packed, meta


# ---------------------------------------------------------------------------
# Forward wrapper
# ---------------------------------------------------------------------------
def edge_model_forward(src, dest, edge_attr, packed, meta, *, tile_e=8192):
    """src/dest: (E, Fn), edge_attr: (E, Fe) -> (E, Fe)."""
    E, Fn = src.shape
    Fe = edge_attr.shape[1]
    P, Fe_pad, hidden = meta["P"], meta["Fe_pad"], meta["hidden"]
    dtype = src.dtype

    # Pad the edge-feature dim to the lane-friendly width (no-op when Fe
    # already divides 128); extra output columns are sliced off at the end.
    if Fe_pad != Fe:
        edge_attr = jnp.pad(edge_attr, ((0, 0), (0, Fe_pad - Fe)))

    # Pad the edge count only to a multiple of 8*P rows (<= 8*P-1 edges),
    # NOT to a full tile; the ragged last grid block is handled by Pallas.
    align_e = 8 * P
    E_pad = pl.cdiv(E, align_e) * align_e
    if E_pad != E:
        pad = ((0, E_pad - E), (0, 0))
        src = jnp.pad(src, pad)
        dest = jnp.pad(dest, pad)
        edge_attr = jnp.pad(edge_attr, pad)

    # Free row-major reshapes: P edges per 128-lane packed row.
    rows = E_pad // P
    src_p = src.reshape(rows, P * Fn)
    dest_p = dest.reshape(rows, P * Fn)
    edge_p = edge_attr.reshape(rows, P * Fe_pad)

    # ---- Tile selection -----------------------------------------------
    # Large requested tile to amortize the ~0.35us/step grid overhead ...
    tile_p = max(8, (tile_e // P) // 8 * 8)
    # ... capped so there are >= 2 grid steps (v7x megacore gets work) ...
    half_rows = max(8, ((rows + 1) // 2 + 7) // 8 * 8)
    tile_p = min(tile_p, half_rows)
    # ... and capped by a conservative VMEM budget: double-buffered f32
    # in/out blocks + f32 h/y temporaries + bf16 operand copies.
    bytes_per_row = (
        4 * 2 * (2 * P * Fn + 2 * P * Fe_pad)          # dbl-buffered in/out
        + 4 * (P * hidden + P * Fe_pad)                # f32 h, y temporaries
        + 2 * (2 * P * Fn + P * Fe_pad + P * hidden))  # bf16 operand copies
    vmem_budget = 12 * 1024 * 1024
    tile_p = min(tile_p, max(8, (vmem_budget // bytes_per_row) // 8 * 8))
    grid = pl.cdiv(rows, tile_p)

    out_p = pl.pallas_call(
        edge_mlp_kernel,
        out_shape=jax.ShapeDtypeStruct((rows, P * Fe_pad), dtype),
        grid_spec=pltpu.PrefetchScalarGridSpec(
            num_scalar_prefetch=0,
            grid=(grid,),
            in_specs=[
                pl.BlockSpec((tile_p, P * Fn), lambda i: (i, 0)),         # src
                pl.BlockSpec((tile_p, P * Fn), lambda i: (i, 0)),         # dest
                pl.BlockSpec((tile_p, P * Fe_pad), lambda i: (i, 0)),     # edge
                pl.BlockSpec((P * Fn, P * hidden), lambda i: (0, 0)),     # w1s
                pl.BlockSpec((P * Fn, P * hidden), lambda i: (0, 0)),     # w1d
                pl.BlockSpec((P * Fe_pad, P * hidden), lambda i: (0, 0)), # w1e
                pl.BlockSpec((1, P * hidden), lambda i: (0, 0)),          # b1
                pl.BlockSpec((P * hidden, P * Fe_pad), lambda i: (0, 0)), # w2
                pl.BlockSpec((1, P * Fe_pad), lambda i: (0, 0)),          # b2
            ],
            out_specs=pl.BlockSpec((tile_p, P * Fe_pad), lambda i: (i, 0)),
        ),
        compiler_params=pltpu.CompilerParams(
            dimension_semantics=("parallel",),
            vmem_limit_bytes=32 * 1024 * 1024,
        ),
    )(src_p, dest_p, edge_p,
      packed["w1s"], packed["w1d"], packed["w1e"], packed["b1"],
      packed["w2"], packed["b2"])

    # Free reshape back to per-edge layout; drop row/column padding.
    return out_p.reshape(E_pad, Fe_pad)[:E, :Fe]


# ---------------------------------------------------------------------------
# Reference + synthetic init (for the demo)
# ---------------------------------------------------------------------------
def init_params(key, num_node_features, num_edge_features):
    """Deterministic synthetic init matching nn.Linear shapes."""
    in_size = 2 * num_node_features + num_edge_features
    hidden = in_size // 2
    k1, k2, k3, k4 = jax.random.split(key, 4)
    scale1 = 1.0 / jnp.sqrt(in_size)
    scale2 = 1.0 / jnp.sqrt(hidden)
    return {
        "w1": jax.random.uniform(k1, (hidden, in_size), jnp.float32, -scale1, scale1),
        "b1": jax.random.uniform(k2, (hidden,), jnp.float32, -scale1, scale1),
        "w2": jax.random.uniform(k3, (num_edge_features, hidden), jnp.float32, -scale2, scale2),
        "b2": jax.random.uniform(k4, (num_edge_features,), jnp.float32, -scale2, scale2),
    }


def reference_forward(src, dest, edge_attr, params):
    x = jnp.concatenate([src, dest, edge_attr], axis=1)
    h = jnp.maximum(x @ params["w1"].T + params["b1"], 0.0)
    return h @ params["w2"].T + params["b2"]


if __name__ == "__main__":
    num_node_features = 16
    num_edge_features = 32
    num_edges = 1000   # deliberately NOT a multiple of 8*P -> exercises the small row pad

    key = jax.random.PRNGKey(0)
    kp, ks, kd, ke = jax.random.split(key, 4)

    params = init_params(kp, num_node_features, num_edge_features)
    src = jax.random.normal(ks, (num_edges, num_node_features), jnp.float32)
    dest = jax.random.normal(kd, (num_edges, num_node_features), jnp.float32)
    edge_attr = jax.random.normal(ke, (num_edges, num_edge_features), jnp.float32)

    ref = reference_forward(src, dest, edge_attr, params)

    # f32 path validates the packing/tiling logic tightly; bf16 path is the
    # production configuration (looser tolerance is the deliberate trade-off).
    for matmul_dtype, atol, rtol in ((jnp.float32, 1e-5, 1e-5),
                                     (jnp.bfloat16, 5e-2, 5e-2)):
        packed, meta = pack_edge_model_params(
            params, num_node_features, num_edge_features, matmul_dtype=matmul_dtype)
        fwd = jax.jit(lambda s, d, e, p: edge_model_forward(s, d, e, p, meta))
        out = jax.block_until_ready(fwd(src, dest, edge_attr, packed))
        assert out.shape == (num_edges, num_edge_features)
        max_err = float(jnp.max(jnp.abs(out - ref)))
        assert jnp.allclose(out, ref, atol=atol, rtol=rtol), (str(matmul_dtype), max_err)

    print("KERNEL_OK")
</pallas_src>

<mosaic_0001>
module attributes {stable_mosaic.version = 11 : i64} {
  func.func @edge_mlp_kernel(%arg0: i32, %arg1: memref<128x64xf32, #tpu.memory_space<vmem>>, %arg2: memref<128x64xf32, #tpu.memory_space<vmem>>, %arg3: memref<128x128xf32, #tpu.memory_space<vmem>>, %arg4: memref<64x128xf32, #tpu.memory_space<vmem>>, %arg5: memref<64x128xf32, #tpu.memory_space<vmem>>, %arg6: memref<128x128xf32, #tpu.memory_space<vmem>>, %arg7: memref<1x128xf32, #tpu.memory_space<vmem>>, %arg8: memref<128x128xf32, #tpu.memory_space<vmem>>, %arg9: memref<1x128xf32, #tpu.memory_space<vmem>>, %arg10: memref<128x128xf32, #tpu.memory_space<vmem>>) attributes {dimension_semantics = [#tpu.dimension_semantics<parallel>], iteration_bounds = array<i64: 2>, scalar_prefetch = 0 : i64, scratch_operands = 0 : i64, tpu.core_type = #tpu.core_type<tc>, window_params = [{transform_indices = @transform_0, window_bounds = array<i64: 128, 64>}, {transform_indices = @transform_1, window_bounds = array<i64: 128, 64>}, {transform_indices = @transform_2, window_bounds = array<i64: 128, 128>}, {pipeline_mode = #tpu.pipeline_mode<synchronous>, transform_indices = @transform_3, window_bounds = array<i64: 64, 128>}, {pipeline_mode = #tpu.pipeline_mode<synchronous>, transform_indices = @transform_4, window_bounds = array<i64: 64, 128>}, {pipeline_mode = #tpu.pipeline_mode<synchronous>, transform_indices = @transform_5, window_bounds = array<i64: 128, 128>}, {pipeline_mode = #tpu.pipeline_mode<synchronous>, transform_indices = @transform_6, window_bounds = array<i64: 1, 128>}, {pipeline_mode = #tpu.pipeline_mode<synchronous>, transform_indices = @transform_7, window_bounds = array<i64: 128, 128>}, {pipeline_mode = #tpu.pipeline_mode<synchronous>, transform_indices = @transform_8, window_bounds = array<i64: 1, 128>}, {transform_indices = @transform_9, window_bounds = array<i64: 128, 128>}]} {
    %c0 = arith.constant 0 : index
    %c0_0 = arith.constant 0 : index
    %0 = vector.load %arg1[%c0, %c0_0] : memref<128x64xf32, #tpu.memory_space<vmem>>, vector<128x64xf32>
    %c0_1 = arith.constant 0 : index
    %c0_2 = arith.constant 0 : index
    %1 = vector.load %arg4[%c0_1, %c0_2] : memref<64x128xf32, #tpu.memory_space<vmem>>, vector<64x128xf32>
    %cst = arith.constant dense<0.000000e+00> : vector<128x128xf32>
    %2 = tpu.matmul %0, %1, %cst {dimension_numbers = #tpu.dot_dimension_numbers<[1], [0], [0], [1], [0, 0, 1, 1], [], []>} : vector<128x64xf32>, vector<64x128xf32>, vector<128x128xf32> -> vector<128x128xf32>
    %c0_3 = arith.constant 0 : index
    %c0_4 = arith.constant 0 : index
    %3 = vector.load %arg2[%c0_3, %c0_4] : memref<128x64xf32, #tpu.memory_space<vmem>>, vector<128x64xf32>
    %c0_5 = arith.constant 0 : index
    %c0_6 = arith.constant 0 : index
    %4 = vector.load %arg5[%c0_5, %c0_6] : memref<64x128xf32, #tpu.memory_space<vmem>>, vector<64x128xf32>
    %cst_7 = arith.constant dense<0.000000e+00> : vector<128x128xf32>
    %5 = tpu.matmul %3, %4, %cst_7 {dimension_numbers = #tpu.dot_dimension_numbers<[1], [0], [0], [1], [0, 0, 1, 1], [], []>} : vector<128x64xf32>, vector<64x128xf32>, vector<128x128xf32> -> vector<128x128xf32>
    %6 = arith.addf %2, %5 : vector<128x128xf32>
    %c0_8 = arith.constant 0 : index
    %c0_9 = arith.constant 0 : index
    %7 = vector.load %arg3[%c0_8, %c0_9] : memref<128x128xf32, #tpu.memory_space<vmem>>, vector<128x128xf32>
    %c0_10 = arith.constant 0 : index
    %c0_11 = arith.constant 0 : index
    %8 = vector.load %arg6[%c0_10, %c0_11] : memref<128x128xf32, #tpu.memory_space<vmem>>, vector<128x128xf32>
    %cst_12 = arith.constant dense<0.000000e+00> : vector<128x128xf32>
    %9 = tpu.matmul %7, %8, %cst_12 {dimension_numbers = #tpu.dot_dimension_numbers<[1], [0], [0], [1], [0, 0, 1, 1], [], []>} : vector<128x128xf32>, vector<128x128xf32>, vector<128x128xf32> -> vector<128x128xf32>
    %10 = arith.addf %6, %9 : vector<128x128xf32>
    %c0_13 = arith.constant 0 : index
    %c0_14 = arith.constant 0 : index
    %11 = vector.load %arg7[%c0_13, %c0_14] : memref<1x128xf32, #tpu.memory_space<vmem>>, vector<1x128xf32>
    %12 = vector.broadcast %11 : vector<1x128xf32> to vector<128x128xf32>
    %13 = arith.addf %10, %12 : vector<128x128xf32>
    %cst_15 = arith.constant 0.000000e+00 : f32
    %14 = vector.broadcast %cst_15 : f32 to vector<128x128xf32>
    %15 = arith.maximumf %13, %14 : vector<128x128xf32>
    %c0_16 = arith.constant 0 : index
    %c0_17 = arith.constant 0 : index
    %16 = vector.load %arg8[%c0_16, %c0_17] : memref<128x128xf32, #tpu.memory_space<vmem>>, vector<128x128xf32>
    %cst_18 = arith.constant dense<0.000000e+00> : vector<128x128xf32>
    %17 = tpu.matmul %15, %16, %cst_18 {dimension_numbers = #tpu.dot_dimension_numbers<[1], [0], [0], [1], [0, 0, 1, 1], [], []>} : vector<128x128xf32>, vector<128x128xf32>, vector<128x128xf32> -> vector<128x128xf32>
    %c0_19 = arith.constant 0 : index
    %c0_20 = arith.constant 0 : index
    %18 = vector.load %arg9[%c0_19, %c0_20] : memref<1x128xf32, #tpu.memory_space<vmem>>, vector<1x128xf32>
    %19 = vector.broadcast %18 : vector<1x128xf32> to vector<128x128xf32>
    %20 = arith.addf %17, %19 : vector<128x128xf32>
    %c0_21 = arith.constant 0 : index
    %c0_22 = arith.constant 0 : index
    %21 = vector.load %arg10[%c0_21, %c0_22] : memref<128x128xf32, #tpu.memory_space<vmem>>, vector<128x128xf32>
    tpu.vector_store %arg10[%c0_21, %c0_22], %20 {strides = array<i32>} : memref<128x128xf32, #tpu.memory_space<vmem>>, vector<128x128xf32>,
    return
  }
  func.func @transform_0(%arg0: i32) -> (i32, i32) {
    %c0_i32 = arith.constant 0 : i32
    %c0_i32_0 = arith.constant 0 : i32
    return %arg0, %c0_i32 : i32, i32
  }
  func.func @transform_1(%arg0: i32) -> (i32, i32) {
    %c0_i32 = arith.constant 0 : i32
    %c0_i32_0 = arith.constant 0 : i32
    return %arg0, %c0_i32 : i32, i32
  }
  func.func @transform_2(%arg0: i32) -> (i32, i32) {
    %c0_i32 = arith.constant 0 : i32
    %c0_i32_0 = arith.constant 0 : i32
    return %arg0, %c0_i32 : i32, i32
  }
  func.func @transform_3(%arg0: i32) -> (i32, i32) {
    %c0_i32 = arith.constant 0 : i32
    %c0_i32_0 = arith.constant 0 : i32
    %c0_i32_1 = arith.constant 0 : i32
    return %c0_i32, %c0_i32_0 : i32, i32
  }
  func.func @transform_4(%arg0: i32) -> (i32, i32) {
    %c0_i32 = arith.constant 0 : i32
    %c0_i32_0 = arith.constant 0 : i32
    %c0_i32_1 = arith.constant 0 : i32
    return %c0_i32, %c0_i32_0 : i32, i32
  }
  func.func @transform_5(%arg0: i32) -> (i32, i32) {
    %c0_i32 = arith.constant 0 : i32
    %c0_i32_0 = arith.constant 0 : i32
    %c0_i32_1 = arith.constant 0 : i32
    return %c0_i32, %c0_i32_0 : i32, i32
  }
  func.func @transform_6(%arg0: i32) -> (i32, i32) {
    %c0_i32 = arith.constant 0 : i32
    %c0_i32_0 = arith.constant 0 : i32
    %c0_i32_1 = arith.constant 0 : i32
    return %c0_i32, %c0_i32_0 : i32, i32
  }
  func.func @transform_7(%arg0: i32) -> (i32, i32) {
    %c0_i32 = arith.constant 0 : i32
    %c0_i32_0 = arith.constant 0 : i32
    %c0_i32_1 = arith.constant 0 : i32
    return %c0_i32, %c0_i32_0 : i32, i32
  }
  func.func @transform_8(%arg0: i32) -> (i32, i32) {
    %c0_i32 = arith.constant 0 : i32
    %c0_i32_0 = arith.constant 0 : i32
    %c0_i32_1 = arith.constant 0 : i32
    return %c0_i32, %c0_i32_0 : i32, i32
  }
  func.func @transform_9(%arg0: i32) -> (i32, i32) {
    %c0_i32 = arith.constant 0 : i32
    %c0_i32_0 = arith.constant 0 : i32
    return %arg0, %c0_i32 : i32, i32
  }
}

</mosaic_0001>

<bundles_post_ra>
// kernel: _lambda_.1
= control target key start
LH: loop header
LB: loop body
LE: loop exit
PB: predicated region body
PF: predicated region fallthrough
CT: control target
= control target key end

     0   :  { %s1132_s30 = smov 0   ;;  %s1436_s0 = inlined_call_operand.vmem [shape: f32[256,64], index: 0, kind: input, shape index: {}]   ;;  %s1437_s1 = inlined_call_operand.vmem [shape: f32[256,64], index: 1, kind: input, shape index: {}]   ;;  %s1438_s2 = inlined_call_operand.vmem [shape: f32[256,128], index: 2, kind: input, shape index: {}]   ;;  %s1439_s3 = inlined_call_operand.vmem [shape: f32[64,128], index: 3, kind: input, shape index: {}]   ;;  %s1440_s4 = inlined_call_operand.vmem [shape: f32[64,128], index: 4, kind: input, shape index: {}]   ;;  %s1441_s5 = inlined_call_operand.vmem [shape: f32[128,128], index: 5, kind: input, shape index: {}]   ;;  %s1442_s6 = inlined_call_operand.vmem [shape: f32[1,128], index: 6, kind: input, shape index: {}]   ;;  %s1443_s7 = inlined_call_operand.vmem [shape: f32[128,128], index: 7, kind: input, shape index: {}]   ;;  %s1444_s8 = inlined_call_operand.vmem [shape: f32[1,128], index: 8, kind: input, shape index: {}]   ;;  %s1445_s9 = inlined_call_operand.vmem [shape: f32[256,128], index: 9, kind: output, shape index: {}]  }
   0x1 LB: > { %s985_s10 = sadd.s32 4294967295, %s1080_s30   ;;  %p989_p0 = scmp.ge.s32.totalorder %s1080_s30, 1  ;;  %s1080_s30 = sphi %s1132_s30, %s19_s30  }
   0x2   : > { %p310_p1 = scmp.lt.s32.totalorder %s1080_s30, 3 }
   0x4   : > { %p311_p2 = pnand %p989_p0, %p310_p1 }
   0x5   : > { %s990_s17 = sshll.u32 (!%p311_p2), %s985_s10, 4 }
   0x6   : > { %314 = sbr.rel (%p311_p2) target bundleno = 429 (0x1ad), region = 56  ;;  %p357_p3 = scmp.lt.s32.totalorder (!%p311_p2), %s990_s17, 31 }
   0xb   : > { %v427_v0 = vld [vmem:[%s1440_s4 + $0x38] sm:$0xff]  ;;  %v426_v2 = vld [vmem:[%s1440_s4 + $0x30] sm:$0xff]  ;;  %v425_v4 = vld [vmem:[%s1440_s4 + $0x28] sm:$0xff]  ;;  %s1447_s17 = smov (!%p357_p3, %s990_s17), 31  ;;  %vm428_vm0 = vcmask 523264  }
   0xc   : > { %v686_v1 = vld [vmem:[%s1441_s5 + $0x78] sm:$0xff]  ;;  %485 = vmatpush.msra.mxu0 %v427_v0  ;;  %v685_v3 = vld [vmem:[%s1441_s5 + $0x70] sm:$0xff]  ;;  %v684_v5 = vld [vmem:[%s1441_s5 + $0x68] sm:$0xff]  ;;  %s1176_s16 = sshll.u32 %s1447_s17, 3 }
   0xd   : > { %1032 = vmatpush.msra.mxu2 %v686_v1  ;;  %v424_v6 = vld [vmem:[%s1440_s4 + $0x20] sm:$0xff]  ;;  %v403_v8 = vld [vmem:[%s1439_s3 + $0x38] sm:$0xff]  ;;  %v402_v9 = vld [vmem:[%s1439_s3 + $0x30] sm:$0xff]  ;;  %s1200_s11 = scalar_lea.vmem %s1437_s1, %s1176_s16  ;;  %s1225_s27 = scalar_lea.vmem %s1436_s0, %s1176_s16 }
   0xe   : > { %486 = vmatpush.msra.mxu0 %v426_v2  ;;  %v683_v7 = vld [vmem:[%s1441_s5 + $0x60] sm:$0xff]  ;;  %v423_v10 = vld [vmem:[%s1440_s4 + $0x18] sm:$0xff]  ;;  %598 = vmatpush.msra.mxu1 %v403_v8  ;;  %v401_v12 = vld [vmem:[%s1439_s3 + $0x28] sm:$0xff]  ;;  %s1257_s26 = scalar_lea.vmem %s1438_s2, %s1176_s16  ;;  %s1415_s14 = scalar_lea.vmem %s1445_s9, %s1176_s16 }
   0xf   : > { %1033 = vmatpush.msra.mxu2 %v685_v3  ;;  %v682_v11 = vld [vmem:[%s1441_s5 + $0x58] sm:$0xff]  ;;  %v422_v13 = vld [vmem:[%s1440_s4 + $0x10] sm:$0xff]  ;;  %v400_v15 = vld [vmem:[%s1439_s3 + $0x20] sm:$0xff] }
  0x10   : > { %487 = vmatpush.msra.mxu0 %v425_v4  ;;  %v681_v14 = vld [vmem:[%s1441_s5 + $0x50] sm:$0xff]  ;;  %599 = vmatpush.msra.mxu1 %v402_v9  ;;  %v421_v16 = vld [vmem:[%s1440_s4 + $0x8] sm:$0xff]  ;;  %v399_v18 = vld [vmem:[%s1439_s3 + $0x18] sm:$0xff] }
  0x11   : > { %1034 = vmatpush.msra.mxu2 %v684_v5  ;;  %v680_v17 = vld [vmem:[%s1441_s5 + $0x48] sm:$0xff]  ;;  %v420_v19 = vld [vmem:[%s1440_s4] sm:$0xff]  ;;  %v398_v22 = vld [vmem:[%s1439_s3 + $0x10] sm:$0xff] }
  0x12   : > { %488 = vmatpush.msra.mxu0 %v424_v6  ;;  %600 = vmatpush.msra.mxu1 %v401_v12  ;;  %v679_v20 = vld [vmem:[%s1441_s5 + $0x40] sm:$0xff]  ;;  %v678_v23 = vld [vmem:[%s1441_s5 + $0x38] sm:$0xff]  ;;  %v397_v24 = vld [vmem:[%s1439_s3 + $0x8] sm:$0xff] }
  0x13   : > { %1035 = vmatpush.msra.mxu2 %v683_v7  ;;  %v404_v21 = vld [vmem:[%s1200_s11] sm:$0xff]  ;;  %v677_v25 = vld [vmem:[%s1441_s5 + $0x30] sm:$0xff]  ;;  %v676_v27 = vld [vmem:[%s1441_s5 + $0x28] sm:$0xff] }
  0x14   : > { %489 = vmatpush.msra.mxu0 %v423_v10  ;;  %601 = vmatpush.msra.mxu1 %v400_v15  ;;  %v396_v26 = vld [vmem:[%s1439_s3] sm:$0xff]  ;;  %v405_v30 = vld [vmem:[%s1200_s11 + $0x8] sm:$0xff]  ;;  %v674_v31 = vld [vmem:[%s1441_s5 + $0x18] sm:$0xff] }
  0x15   : > { %1036 = vmatpush.msra.mxu2 %v682_v11  ;;  %v380_v28 = vld [vmem:[%s1225_s27] sm:$0xff]  ;;  %v673_v32 = vld [vmem:[%s1441_s5 + $0x10] sm:$0xff]  ;;  %v672_v33 = vld [vmem:[%s1441_s5 + $0x8] sm:$0xff] }
  0x16   : > { %490 = vmatpush.msra.mxu0 %v422_v13  ;;  %602 = vmatpush.msra.mxu1 %v399_v18  ;;  %v675_v29 = vld [vmem:[%s1441_s5 + $0x20] sm:$0xff]  ;;  %v381_v34 = vld [vmem:[%s1225_s27 + $0x8] sm:$0xff]  ;;  %v406_v36 = vld [vmem:[%s1200_s11 + $0x10] sm:$0xff] }
  0x17   : > { %1037 = vmatpush.msra.mxu2 %v681_v14  ;;  %v671_v35 = vld [vmem:[%s1441_s5] sm:$0xff]  ;;  %v656_v37 = vld [vmem:[%s1257_s26 + $0x8] sm:$0xff]  ;;  %v382_v38 = vld [vmem:[%s1225_s27 + $0x10] sm:$0xff] }
  0x18   : > { %491 = vmatpush.msra.mxu0 %v421_v16  ;;  %603 = vmatpush.msra.mxu1 %v398_v22  ;;  %v407_v39 = vld [vmem:[%s1200_s11 + $0x18] sm:$0xff]  ;;  %v657_v40 = vld [vmem:[%s1257_s26 + $0x10] sm:$0xff]  ;;  %v408_v42 = vld [vmem:[%s1200_s11 + $0x20] sm:$0xff] }
  0x19   : > { %1038 = vmatpush.msra.mxu2 %v680_v17  ;;  %v383_v41 = vld [vmem:[%s1225_s27 + $0x18] sm:$0xff]  ;;  %v384_v44 = vld [vmem:[%s1225_s27 + $0x20] sm:$0xff]  ;;  %v409_v45 = vld [vmem:[%s1200_s11 + $0x28] sm:$0xff] }
  0x1a   : > { %492 = vmatpush.msra.mxu0 %v420_v19  ;;  %604 = vmatpush.msra.mxu1 %v397_v24  ;;  %v658_v43 = vld [vmem:[%s1257_s26 + $0x18] sm:$0xff]  ;;  %v659_v46 = vld [vmem:[%s1257_s26 + $0x20] sm:$0xff]  ;;  %v385_v47 = vld [vmem:[%s1225_s27 + $0x28] sm:$0xff] }
  0x1b   : > { %1039 = vmatpush.msra.mxu2 %v679_v20  ;;  %998 = vmatmul.msk.f32.vlgmr.msra.gmra.mxu0 %vm428_vm0, %v404_v21  ;;  %v410_v48 = vld [vmem:[%s1200_s11 + $0x30] sm:$0xff]  ;;  %v660_v49 = vld [vmem:[%s1257_s26 + $0x28] sm:$0xff]  ;;  %v411_v51 = vld [vmem:[%s1200_s11 + $0x38] sm:$0xff] }
  0x1c   : > { %687 = vmatpush.msrb.mxu0 %v686_v1  ;;  %605 = vmatpush.msra.mxu1 %v396_v26  ;;  %v386_v50 = vld [vmem:[%s1225_s27 + $0x30] sm:$0xff]  ;;  %v387_v53 = vld [vmem:[%s1225_s27 + $0x38] sm:$0xff]  ;;  %v412_v54 = vld [vmem:[%s1200_s11 + $0x40] sm:$0xff] }
  0x1d   : > { %1040 = vmatpush.msra.mxu2 %v678_v23  ;;  %1014 = vmatmul.msk.f32.vlgmr.msra.gmra.mxu1 %vm428_vm0, %v380_v28  ;;  %v661_v52 = vld [vmem:[%s1257_s26 + $0x30] sm:$0xff]  ;;  %v662_v55 = vld [vmem:[%s1257_s26 + $0x38] sm:$0xff]  ;;  %v388_v56 = vld [vmem:[%s1225_s27 + $0x40] sm:$0xff] }
  0x1e   : > { %688 = vmatpush.msrb.mxu0 %v685_v3  ;;  %v413_v57 = vld [vmem:[%s1200_s11 + $0x48] sm:$0xff]  ;;  %v663_v58 = vld [vmem:[%s1257_s26 + $0x40] sm:$0xff]  ;;  %v414_v60 = vld [vmem:[%s1200_s11 + $0x50] sm:$0xff] }
  0x1f   : > { %1041 = vmatpush.msra.mxu2 %v677_v25  ;;  %v389_v59 = vld [vmem:[%s1225_s27 + $0x48] sm:$0xff]  ;;  %v390_v62 = vld [vmem:[%s1225_s27 + $0x50] sm:$0xff]  ;;  %v415_v63 = vld [vmem:[%s1200_s11 + $0x58] sm:$0xff] }
  0x20   : > { %689 = vmatpush.msrb.mxu0 %v684_v5  ;;  %v664_v61 = vld [vmem:[%s1257_s26 + $0x48] sm:$0xff]  ;;  %v665_v0 = vld [vmem:[%s1257_s26 + $0x50] sm:$0xff]  ;;  %v819_v1 = vld [vmem:[%s1443_s7 + $0x78] sm:$0xff] }
  0x21   : > { %1042 = vmatpush.msra.mxu2 %v676_v27  ;;  %1048 = vmatpush.msra.mxu3 %v819_v1  ;;  %v391_v2 = vld [vmem:[%s1225_s27 + $0x58] sm:$0xff]  ;;  %v818_v3 = vld [vmem:[%s1443_s7 + $0x70] sm:$0xff]  ;;  %v416_v4 = vld [vmem:[%s1200_s11 + $0x60] sm:$0xff] }
  0x22   : > { %690 = vmatpush.msrb.mxu0 %v683_v7  ;;  %824 = vmatpush.msrb.mxu1 %v819_v1  ;;  %v666_v5 = vld [vmem:[%s1257_s26 + $0x58] sm:$0xff]  ;;  %v817_v6 = vld [vmem:[%s1443_s7 + $0x68] sm:$0xff]  ;;  %v816_v7 = vld [vmem:[%s1443_s7 + $0x60] sm:$0xff] }
  0x23   : > { %1043 = vmatpush.msra.mxu2 %v675_v29  ;;  %999 = vmatmul.msk.f32.gmra.mxu0 %vm428_vm0, %v405_v30  ;;  %v815_v8 = vld [vmem:[%s1443_s7 + $0x58] sm:$0xff]  ;;  %v392_v9 = vld [vmem:[%s1225_s27 + $0x60] sm:$0xff]  ;;  %v814_v10 = vld [vmem:[%s1443_s7 + $0x50] sm:$0xff] }
  0x24   : > { %691 = vmatpush.msrb.mxu0 %v682_v11  ;;  %1049 = vmatpush.msra.mxu3 %v818_v3  ;;  %v417_v11 = vld [vmem:[%s1200_s11 + $0x68] sm:$0xff]  ;;  %v667_v12 = vld [vmem:[%s1257_s26 + $0x60] sm:$0xff]  ;;  %v811_v15 = vld [vmem:[%s1443_s7 + $0x38] sm:$0xff] }
  0x25   : > { %1044 = vmatpush.msra.mxu2 %v674_v31  ;;  %1015 = vmatmul.msk.f32.gmra.mxu1 %vm428_vm0, %v381_v34  ;;  %v813_v13 = vld [vmem:[%s1443_s7 + $0x48] sm:$0xff]  ;;  %v418_v18 = vld [vmem:[%s1200_s11 + $0x70] sm:$0xff]  ;;  %v808_v21 = vld [vmem:[%s1443_s7 + $0x20] sm:$0xff] }
  0x26   : > { %692 = vmatpush.msrb.mxu0 %v681_v14  ;;  %825 = vmatpush.msrb.mxu1 %v818_v3  ;;  %v812_v14 = vld [vmem:[%s1443_s7 + $0x40] sm:$0xff]  ;;  %v393_v16 = vld [vmem:[%s1225_s27 + $0x68] sm:$0xff]  ;;  %v394_v22 = vld [vmem:[%s1225_s27 + $0x70] sm:$0xff] }
  0x27   : > { %1045 = vmatpush.msra.mxu2 %v673_v32  ;;  %1050 = vmatpush.msra.mxu3 %v817_v6  ;;  %v668_v19 = vld [vmem:[%s1257_s26 + $0x68] sm:$0xff]  ;;  %v806_v24 = vld [vmem:[%s1443_s7 + $0x10] sm:$0xff]  ;;  %v804_v28 = vld [vmem:[%s1443_s7] sm:$0xff] }
  0x28   : > { %693 = vmatpush.msrb.mxu0 %v680_v17  ;;  %826 = vmatpush.msrb.mxu1 %v817_v6  ;;  %v810_v17 = vld [vmem:[%s1443_s7 + $0x30] sm:$0xff] }
  0x29   : > { %1046 = vmatpush.msra.mxu2 %v672_v33  ;;  %1051 = vmatpush.msra.mxu3 %v816_v7  ;;  %v669_v26 = vld [vmem:[%s1257_s26 + $0x70] sm:$0xff] }
  0x2a   : > { %694 = vmatpush.msrb.mxu0 %v679_v20  ;;  %827 = vmatpush.msrb.mxu1 %v816_v7  ;;  %v809_v20 = vld [vmem:[%s1443_s7 + $0x28] sm:$0xff] }
  0x2b   : > { %1047 = vmatpush.msra.mxu2 %v671_v35  ;;  %1000 = vmatmul.msk.f32.gmra.mxu0 %vm428_vm0, %v406_v36 }
  0x2c   : > { %706 = vmatmul.f32.vlgmr.msra.gmra.mxu2 %v656_v37  ;;  %695 = vmatpush.msrb.mxu0 %v678_v23  ;;  %v807_v23 = vld [vmem:[%s1443_s7 + $0x18] sm:$0xff] }
  0x2d   : > { %1016 = vmatmul.msk.f32.gmra.mxu1 %vm428_vm0, %v382_v38  ;;  %1052 = vmatpush.msra.mxu3 %v815_v8 }
  0x2e   : > { %696 = vmatpush.msrb.mxu0 %v677_v25  ;;  %828 = vmatpush.msrb.mxu1 %v815_v8  ;;  %v419_v25 = vld [vmem:[%s1200_s11 + $0x78] sm:$0xff] }
  0x2f   : > { %1053 = vmatpush.msra.mxu3 %v814_v10 }
  0x30   : > { %697 = vmatpush.msrb.mxu0 %v676_v27  ;;  %829 = vmatpush.msrb.mxu1 %v814_v10  ;;  %v805_v27 = vld [vmem:[%s1443_s7 + $0x8] sm:$0xff] }
  0x31   : > { %1054 = vmatpush.msra.mxu3 %v813_v13 }
  0x32   : > { %698 = vmatpush.msrb.mxu0 %v675_v29  ;;  %830 = vmatpush.msrb.mxu1 %v813_v13  ;;  %v395_v29 = vld [vmem:[%s1225_s27 + $0x78] sm:$0xff] }
  0x33   : > { %1001 = vmatmul.msk.f32.gmra.mxu0 %vm428_vm0, %v407_v39  ;;  %1055 = vmatpush.msra.mxu3 %v812_v14 }
  0x34   : > { %709 = vmatmul.f32.gmra.mxu2 %v657_v40  ;;  %699 = vmatpush.msrb.mxu0 %v674_v31  ;;  %v655_v31 = vld [vmem:[%s1257_s26] sm:$0xff] }
  0x35   : > { %1017 = vmatmul.msk.f32.gmra.mxu1 %vm428_vm0, %v383_v41  ;;  %1056 = vmatpush.msra.mxu3 %v811_v15  ;;  %v1389_v40 = vld [vmem:[%s1442_s6] ss:$0 sm:$0xff] }
  0x36   : > { %700 = vmatpush.msrb.mxu0 %v673_v32  ;;  %831 = vmatpush.msrb.mxu1 %v812_v14  ;;  %v670_v32 = vld [vmem:[%s1257_s26 + $0x78] sm:$0xff] }
  0x37   : > { %1057 = vmatpush.msra.mxu3 %v810_v17 }
  0x38   : > { %701 = vmatpush.msrb.mxu0 %v672_v33  ;;  %832 = vmatpush.msrb.mxu1 %v811_v15 }
  0x39   : > { %1058 = vmatpush.msra.mxu3 %v809_v20 }
  0x3a   : > { %702 = vmatpush.msrb.mxu0 %v671_v35  ;;  %833 = vmatpush.msrb.mxu1 %v810_v17 }
  0x3b   : > { %1002 = vmatmul.msk.f32.gmra.mxu0 %vm428_vm0, %v408_v42  ;;  %1059 = vmatpush.msra.mxu3 %v808_v21 }
  0x3c   : > { %712 = vmatmul.f32.gmra.mxu2 %v658_v43  ;;  %834 = vmatpush.msrb.mxu1 %v809_v20 }
  0x3d   : > { %1018 = vmatmul.msk.f32.gmra.mxu1 %vm428_vm0, %v384_v44  ;;  %1060 = vmatpush.msra.mxu3 %v807_v23 }
  0x3e   : > { %835 = vmatpush.msrb.mxu1 %v808_v21 }
  0x3f   : > { %1061 = vmatpush.msra.mxu3 %v806_v24 }
  0x40   : > { %836 = vmatpush.msrb.mxu1 %v807_v23 }
  0x41   : > { %1062 = vmatpush.msra.mxu3 %v805_v27 }
  0x42   : > { %837 = vmatpush.msrb.mxu1 %v806_v24 }
  0x43   : > { %1003 = vmatmul.msk.f32.gmra.mxu0 %vm428_vm0, %v409_v45  ;;  %1063 = vmatpush.msra.mxu3 %v804_v28 }
  0x44   : > { %715 = vmatmul.f32.gmra.mxu2 %v659_v46  ;;  %838 = vmatpush.msrb.mxu1 %v805_v27 }
  0x45   : > { %1019 = vmatmul.msk.f32.gmra.mxu1 %vm428_vm0, %v385_v47 }
  0x46   : > { %839 = vmatpush.msrb.mxu1 %v804_v28 }
  0x4b   : > { %1004 = vmatmul.msk.f32.gmra.mxu0 %vm428_vm0, %v410_v48 }
  0x4c   : > { %718 = vmatmul.f32.gmra.mxu2 %v660_v49 }
  0x4d   : > { %1020 = vmatmul.msk.f32.gmra.mxu1 %vm428_vm0, %v386_v50 }
  0x53   : > { %1005 = vmatmul.msk.f32.gmra.mxu0 %vm428_vm0, %v411_v51 }
  0x54   : > { %721 = vmatmul.f32.gmra.mxu2 %v661_v52 }
  0x55   : > { %1021 = vmatmul.msk.f32.gmra.mxu1 %vm428_vm0, %v387_v53 }
  0x5b   : > { %1006 = vmatmul.msk.f32.gmra.mxu0 %vm428_vm0, %v412_v54 }
  0x5c   : > { %724 = vmatmul.f32.gmra.mxu2 %v662_v55 }
  0x5d   : > { %1022 = vmatmul.msk.f32.gmra.mxu1 %vm428_vm0, %v388_v56 }
  0x63   : > { %1007 = vmatmul.msk.f32.gmra.mxu0 %vm428_vm0, %v413_v57 }
  0x64   : > { %727 = vmatmul.f32.gmra.mxu2 %v663_v58 }
  0x65   : > { %1023 = vmatmul.msk.f32.gmra.mxu1 %vm428_vm0, %v389_v59 }
  0x6b   : > { %1008 = vmatmul.msk.f32.gmra.mxu0 %vm428_vm0, %v414_v60 }
  0x6c   : > { %730 = vmatmul.f32.gmra.mxu2 %v664_v61 }
  0x6d   : > { %1024 = vmatmul.msk.f32.gmra.mxu1 %vm428_vm0, %v390_v62 }
  0x73   : > { %1009 = vmatmul.msk.f32.gmra.mxu0 %vm428_vm0, %v415_v63 }
  0x74   : > { %733 = vmatmul.f32.gmra.mxu2 %v665_v0 }
  0x75   : > { %1025 = vmatmul.msk.f32.gmra.mxu1 %vm428_vm0, %v391_v2 }
  0x7b   : > { %1010 = vmatmul.msk.f32.gmra.mxu0 %vm428_vm0, %v416_v4 }
  0x7c   : > { %736 = vmatmul.f32.gmra.mxu2 %v666_v5 }
  0x7d   : > { %1026 = vmatmul.msk.f32.gmra.mxu1 %vm428_vm0, %v392_v9 }
  0x83   : > { %1011 = vmatmul.msk.f32.gmra.mxu0 %vm428_vm0, %v417_v11 }
  0x84   : > { %739 = vmatmul.f32.gmra.mxu2 %v667_v12 }
  0x85   : > { %1027 = vmatmul.msk.f32.gmra.mxu1 %vm428_vm0, %v393_v16 }
  0x8b   : > { %1012 = vmatmul.msk.f32.gmra.mxu0 %vm428_vm0, %v418_v18 }
  0x8c   : > { %742 = vmatmul.f32.gmra.mxu2 %v668_v19 }
  0x8d   : > { %1028 = vmatmul.msk.f32.gmra.mxu1 %vm428_vm0, %v394_v22 }
  0x93   : > { %1013 = vmatmul.msk.f32.gmra.mxu0 %vm428_vm0, %v419_v25 }
  0x94   : > { %745 = vmatmul.f32.gmra.mxu2 %v669_v26 }
  0x95   : > { %1029 = vmatmul.msk.f32.gmra.mxu1 %vm428_vm0, %v395_v29 }
  0x98   : > { %v494_v30 = vpop.f32.mrf.mxu0 }
  0x9a   : > { %v607_v33 = vpop.f32.mrf.mxu1 }
  0x9b   : > { %703 = vmatmul.f32.vlgmr.msrb.gmra.mxu0 %v655_v31  ;;  %v1384_v34 = vadd.f32 %v607_v33, %v494_v30 }
  0x9c   : > { %748 = vmatmul.f32.gmra.mxu2 %v670_v32 }
  0xa0   : > { %v497_v35 = vpop.f32.mrf.mxu0 }
  0xa2   : > { %v610_v36 = vpop.f32.mrf.mxu1 }
  0xa3   : > { %v611_v38 = vadd.f32 %v610_v36, %v497_v35 }
  0xa8   : > { %v500_v37 = vpop.f32.mrf.mxu0 }
  0xaa   : > { %v613_v39 = vpop.f32.mrf.mxu1 }
  0xab   : > { %v614_v45 = vadd.f32 %v613_v39, %v500_v37 }
  0xaf   : > { %v707_v41 = vpop.f32.mrf.mxu2 }
  0xb0   : > { %v753_v42 = vadd.f32 %v707_v41, %v611_v38  ;;  %v503_v43 = vpop.f32.mrf.mxu0 }
  0xb2   : > { %v773_v44 = vadd.f32 %v1389_v40, %v753_v42  ;;  %v616_v47 = vpop.f32.mrf.mxu1 }
  0xb3   : > { %v617_v52 = vadd.f32 %v616_v47, %v503_v43 }
  0xb4   : > { %v789_v46 = vmax.f32 %v773_v44, 0.0 }
  0xb6   : > { %843 = vmatmul.f32.vlgmr.msra.gmra.mxu3 %v789_v46 }
  0xb7   : > { %v710_v48 = vpop.f32.mrf.mxu2 }
  0xb8   : > { %v754_v49 = vadd.f32 %v710_v48, %v614_v45  ;;  %v506_v50 = vpop.f32.mrf.mxu0 }
  0xba   : > { %v774_v51 = vadd.f32 %v1389_v40, %v754_v49  ;;  %v619_v54 = vpop.f32.mrf.mxu1 }
  0xbb   : > { %v620_v59 = vadd.f32 %v619_v54, %v506_v50 }
  0xbc   : > { %v790_v53 = vmax.f32 %v774_v51, 0.0 }
  0xbe   : > { %846 = vmatmul.f32.gmra.mxu3 %v790_v53 }
  0xbf   : > { %v713_v55 = vpop.f32.mrf.mxu2 }
  0xc0   : > { %v755_v56 = vadd.f32 %v713_v55, %v617_v52  ;;  %v509_v57 = vpop.f32.mrf.mxu0 }
  0xc2   : > { %v775_v58 = vadd.f32 %v1389_v40, %v755_v56  ;;  %v622_v61 = vpop.f32.mrf.mxu1 }
  0xc3   : > { %v623_v2 = vadd.f32 %v622_v61, %v509_v57 }
  0xc4   : > { %v791_v60 = vmax.f32 %v775_v58, 0.0 }
  0xc6   : > { %849 = vmatmul.f32.gmra.mxu3 %v791_v60 }
  0xc7   : > { %v716_v62 = vpop.f32.mrf.mxu2 }
  0xc8   : > { %v756_v63 = vadd.f32 %v716_v62, %v620_v59  ;;  %v512_v0 = vpop.f32.mrf.mxu0 }
  0xca   : > { %v776_v1 = vadd.f32 %v1389_v40, %v756_v63  ;;  %v625_v4 = vpop.f32.mrf.mxu1 }
  0xcb   : > { %v626_v9 = vadd.f32 %v625_v4, %v512_v0 }
  0xcc   : > { %v792_v3 = vmax.f32 %v776_v1, 0.0 }
  0xce   : > { %852 = vmatmul.f32.gmra.mxu3 %v792_v3 }
  0xcf   : > { %v719_v5 = vpop.f32.mrf.mxu2 }
  0xd0   : > { %v757_v6 = vadd.f32 %v719_v5, %v623_v2  ;;  %v515_v7 = vpop.f32.mrf.mxu0 }
  0xd2   : > { %v777_v8 = vadd.f32 %v1389_v40, %v757_v6  ;;  %v628_v11 = vpop.f32.mrf.mxu1 }
  0xd3   : > { %v629_v16 = vadd.f32 %v628_v11, %v515_v7 }
  0xd4   : > { %v793_v10 = vmax.f32 %v777_v8, 0.0 }
  0xd6   : > { %855 = vmatmul.f32.gmra.mxu3 %v793_v10 }
  0xd7   : > { %v722_v12 = vpop.f32.mrf.mxu2 }
  0xd8   : > { %v758_v13 = vadd.f32 %v722_v12, %v626_v9  ;;  %v518_v14 = vpop.f32.mrf.mxu0 }
  0xda   : > { %v778_v15 = vadd.f32 %v1389_v40, %v758_v13  ;;  %v631_v18 = vpop.f32.mrf.mxu1 }
  0xdb   : > { %v632_v23 = vadd.f32 %v631_v18, %v518_v14 }
  0xdc   : > { %v794_v17 = vmax.f32 %v778_v15, 0.0 }
  0xde   : > { %858 = vmatmul.f32.gmra.mxu3 %v794_v17 }
  0xdf   : > { %v725_v19 = vpop.f32.mrf.mxu2 }
  0xe0   : > { %v759_v20 = vadd.f32 %v725_v19, %v629_v16  ;;  %v521_v21 = vpop.f32.mrf.mxu0  ;;  %v1073_v19 = vld [vmem:[%s1444_s8] ss:$0 sm:$0xff] }
  0xe2   : > { %v779_v22 = vadd.f32 %v1389_v40, %v759_v20  ;;  %v634_v25 = vpop.f32.mrf.mxu1 }
  0xe3   : > { %v635_v30 = vadd.f32 %v634_v25, %v521_v21 }
  0xe4   : > { %v795_v24 = vmax.f32 %v779_v22, 0.0 }
  0xe6   : > { %861 = vmatmul.f32.gmra.mxu3 %v795_v24 }
  0xe7   : > { %v728_v26 = vpop.f32.mrf.mxu2 }
  0xe8   : > { %v760_v27 = vadd.f32 %v728_v26, %v632_v23  ;;  %v524_v28 = vpop.f32.mrf.mxu0 }
  0xea   : > { %v780_v29 = vadd.f32 %v1389_v40, %v760_v27  ;;  %v637_v32 = vpop.f32.mrf.mxu1 }
  0xeb   : > { %v638_v38 = vadd.f32 %v637_v32, %v524_v28 }
  0xec   : > { %v796_v31 = vmax.f32 %v780_v29, 0.0 }
  0xee   : > { %864 = vmatmul.f32.gmra.mxu3 %v796_v31 }
  0xef   : > { %v731_v33 = vpop.f32.mrf.mxu2 }
  0xf0   : > { %v761_v35 = vadd.f32 %v731_v33, %v635_v30  ;;  %v527_v36 = vpop.f32.mrf.mxu0 }
  0xf2   : > { %v781_v37 = vadd.f32 %v1389_v40, %v761_v35  ;;  %v640_v41 = vpop.f32.mrf.mxu1 }
  0xf3   : > { %v641_v46 = vadd.f32 %v640_v41, %v527_v36 }
  0xf4   : > { %v797_v39 = vmax.f32 %v781_v37, 0.0 }
  0xf6   : > { %867 = vmatmul.f32.gmra.mxu3 %v797_v39 }
  0xf7   : > { %v734_v42 = vpop.f32.mrf.mxu2 }
  0xf8   : > { %v762_v43 = vadd.f32 %v734_v42, %v638_v38  ;;  %v530_v44 = vpop.f32.mrf.mxu0 }
  0xfa   : > { %v782_v45 = vadd.f32 %v1389_v40, %v762_v43  ;;  %v643_v48 = vpop.f32.mrf.mxu1 }
  0xfb   : > { %v644_v53 = vadd.f32 %v643_v48, %v530_v44 }
  0xfc   : > { %v798_v47 = vmax.f32 %v782_v45, 0.0 }
  0xfe   : > { %870 = vmatmul.f32.gmra.mxu3 %v798_v47 }
  0xff   : > { %v737_v49 = vpop.f32.mrf.mxu2 }
 0x100   : > { %v763_v50 = vadd.f32 %v737_v49, %v641_v46  ;;  %v533_v51 = vpop.f32.mrf.mxu0 }
 0x102   : > { %v783_v52 = vadd.f32 %v1389_v40, %v763_v50  ;;  %v646_v55 = vpop.f32.mrf.mxu1 }
 0x103   : > { %v647_v60 = vadd.f32 %v646_v55, %v533_v51 }
 0x104   : > { %v799_v54 = vmax.f32 %v783_v52, 0.0 }
 0x106   : > { %873 = vmatmul.f32.gmra.mxu3 %v799_v54 }
 0x107   : > { %v740_v56 = vpop.f32.mrf.mxu2 }
 0x108   : > { %v764_v57 = vadd.f32 %v740_v56, %v644_v53  ;;  %v536_v58 = vpop.f32.mrf.mxu0 }
 0x10a   : > { %v784_v59 = vadd.f32 %v1389_v40, %v764_v57  ;;  %v649_v63 = vpop.f32.mrf.mxu1 }
 0x10b   : > { %v650_v3 = vadd.f32 %v649_v63, %v536_v58 }
 0x10c   : > { %v800_v61 = vmax.f32 %v784_v59, 0.0 }
 0x10e   : > { %876 = vmatmul.f32.gmra.mxu3 %v800_v61 }
 0x10f   : > { %v743_v62 = vpop.f32.mrf.mxu2 }
 0x110   : > { %v765_v0 = vadd.f32 %v743_v62, %v647_v60  ;;  %v539_v1 = vpop.f32.mrf.mxu0 }
 0x112   : > { %v785_v2 = vadd.f32 %v1389_v40, %v765_v0  ;;  %v652_v8 = vpop.f32.mrf.mxu1 }
 0x113   : > { %v653_v12 = vadd.f32 %v652_v8, %v539_v1 }
 0x114   : > { %v801_v4 = vmax.f32 %v785_v2, 0.0 }
 0x116   : > { %879 = vmatmul.f32.gmra.mxu3 %v801_v4 }
 0x117   : > { %v746_v5 = vpop.f32.mrf.mxu2 }
 0x118   : > { %v766_v6 = vadd.f32 %v746_v5, %v650_v3  ;;  %v704_v7 = vpop.f32.mrf.mxu0 }
 0x119   : > { %v752_v9 = vadd.f32 %v704_v7, %v1384_v34 }
 0x11a   : > { %v786_v10 = vadd.f32 %v1389_v40, %v766_v6 }
 0x11b   : > { %v772_v11 = vadd.f32 %v1389_v40, %v752_v9 }
 0x11c   : > { %v802_v13 = vmax.f32 %v786_v10, 0.0 }
 0x11d   : > { %v788_v14 = vmax.f32 %v772_v11, 0.0 }
 0x11e   : > { %882 = vmatmul.f32.gmra.mxu3 %v802_v13 }
 0x11f   : > { %v749_v15 = vpop.f32.mrf.mxu2  ;;  %840 = vmatmul.f32.vlgmr.msrb.gmra.mxu1 %v788_v14 }
 0x120   : > { %v767_v16 = vadd.f32 %v749_v15, %v653_v12 }
 0x122   : > { %v787_v17 = vadd.f32 %v1389_v40, %v767_v16 }
 0x124   : > { %v803_v18 = vmax.f32 %v787_v17, 0.0 }
 0x126   : > { %885 = vmatmul.f32.gmra.mxu3 %v803_v18 }
 0x139   : > { %v844_v34 = vpop.f32.mrf.mxu3 }
 0x13a   : > { %v845_v20 = vadd.f32 %v1073_v19, %v844_v34 }
 0x13c   : > { %890 = vst [vmem:[%s1415_s14 + $0x8] sm:$0xff] %v845_v20 }
 0x141   : > { %v847_v40 = vpop.f32.mrf.mxu3 }
 0x142   : > { %v848_v21 = vadd.f32 %v1073_v19, %v847_v40 }
 0x144   : > { %891 = vst [vmem:[%s1415_s14 + $0x10] sm:$0xff] %v848_v21 }
 0x149   : > { %v850_v22 = vpop.f32.mrf.mxu3 }
 0x14a   : > { %v851_v23 = vadd.f32 %v1073_v19, %v850_v22 }
 0x14c   : > { %892 = vst [vmem:[%s1415_s14 + $0x18] sm:$0xff] %v851_v23 }
 0x151   : > { %v853_v24 = vpop.f32.mrf.mxu3 }
 0x152   : > { %v854_v25 = vadd.f32 %v1073_v19, %v853_v24 }
 0x154   : > { %893 = vst [vmem:[%s1415_s14 + $0x20] sm:$0xff] %v854_v25 }
 0x159   : > { %v856_v26 = vpop.f32.mrf.mxu3 }
 0x15a   : > { %v857_v27 = vadd.f32 %v1073_v19, %v856_v26 }
 0x15c   : > { %894 = vst [vmem:[%s1415_s14 + $0x28] sm:$0xff] %v857_v27 }
 0x161   : > { %v859_v28 = vpop.f32.mrf.mxu3 }
 0x162   : > { %v860_v29 = vadd.f32 %v1073_v19, %v859_v28 }
 0x164   : > { %895 = vst [vmem:[%s1415_s14 + $0x30] sm:$0xff] %v860_v29 }
 0x169   : > { %v862_v30 = vpop.f32.mrf.mxu3 }
 0x16a   : > { %v863_v31 = vadd.f32 %v1073_v19, %v862_v30 }
 0x16c   : > { %896 = vst [vmem:[%s1415_s14 + $0x38] sm:$0xff] %v863_v31 }
 0x171   : > { %v865_v32 = vpop.f32.mrf.mxu3 }
 0x172   : > { %v866_v33 = vadd.f32 %v1073_v19, %v865_v32 }
 0x174   : > { %897 = vst [vmem:[%s1415_s14 + $0x40] sm:$0xff] %v866_v33 }
 0x179   : > { %v868_v35 = vpop.f32.mrf.mxu3 }
 0x17a   : > { %v869_v36 = vadd.f32 %v1073_v19, %v868_v35 }
 0x17c   : > { %898 = vst [vmem:[%s1415_s14 + $0x48] sm:$0xff] %v869_v36 }
 0x181   : > { %v871_v37 = vpop.f32.mrf.mxu3 }
 0x182   : > { %v872_v38 = vadd.f32 %v1073_v19, %v871_v37 }
 0x184   : > { %899 = vst [vmem:[%s1415_s14 + $0x50] sm:$0xff] %v872_v38 }
 0x189   : > { %v874_v39 = vpop.f32.mrf.mxu3 }
 0x18a   : > { %v875_v41 = vadd.f32 %v1073_v19, %v874_v39 }
 0x18c   : > { %900 = vst [vmem:[%s1415_s14 + $0x58] sm:$0xff] %v875_v41 }
 0x191   : > { %v877_v42 = vpop.f32.mrf.mxu3 }
 0x192   : > { %v878_v43 = vadd.f32 %v1073_v19, %v877_v42 }
 0x194   : > { %901 = vst [vmem:[%s1415_s14 + $0x60] sm:$0xff] %v878_v43 }
 0x199   : > { %v880_v44 = vpop.f32.mrf.mxu3 }
 0x19a   : > { %v881_v45 = vadd.f32 %v1073_v19, %v880_v44 }
 0x19c   : > { %902 = vst [vmem:[%s1415_s14 + $0x68] sm:$0xff] %v881_v45  ;;  %v841_v46 = vpop.f32.mrf.mxu1 }
 0x19d   : > { %v842_v47 = vadd.f32 %v1073_v19, %v841_v46 }
 0x19f   : > { %889 = vst [vmem:[%s1415_s14] sm:$0xff] %v842_v47 }
 0x1a1   : > { %v883_v48 = vpop.f32.mrf.mxu3 }
 0x1a2   : > { %v884_v49 = vadd.f32 %v1073_v19, %v883_v48 }
 0x1a4   : > { %903 = vst [vmem:[%s1415_s14 + $0x70] sm:$0xff] %v884_v49 }
 0x1a9   : > { %v886_v50 = vpop.f32.mrf.mxu3 }
 0x1aa   : > { %v887_v51 = vadd.f32 %v1073_v19, %v886_v50 }
 0x1ac   : > { %904 = vst [vmem:[%s1415_s14 + $0x78] sm:$0xff] %v887_v51 }
 0x1ad PF: > { %s19_s30 = sadd.s32 1, %s1080_s30  }
 0x1ae   : > { %p16_p4 = scmp.ge.s32.totalorder %s19_s30, 4  }
 0x1b0   :  { %18 = sbr.rel (!%p16_p4) target bundleno = 1 (0x1), region = 92 }

</bundles_post_ra>
